<compile_context>
chip_gen: v7x
topology: tpu7x:2x2x1
jax: 0.10.0
libtpu: 0.0.40
codegen_flags: <defaults>
</compile_context>

<pallas_src>
import functools

import jax
import jax.numpy as jnp
import numpy as np
from jax import lax
from jax.experimental import pallas as pl
from jax.experimental.pallas import tpu as pltpu


def _seir_chunk_kernel(w_ref, init_ref, out_ref, state_ref, *,
                       t_chunk, h, inv_n, unroll):
    """Runs `t_chunk` Euler steps of the SEIR ODE per grid invocation.

    w_ref    : SMEM (7,)             f32 -- weights; A=w[4], B=w[5], C=w[6]
    init_ref : VMEM (8, LB)          f32 -- initial state (rows 0..3 = S,E,I,R;
                                            rows 4..7 and lanes >= batch are 0)
    out_ref  : VMEM (t_chunk, 8, LB) f32 -- this chunk's per-step outputs
    state_ref: VMEM (8, LB)          f32 scratch -- state carried across chunks
    """
    @pl.when(pl.program_id(0) == 0)
    def _():
        state_ref[...] = init_ref[...]

    # ---- hoisted scalars / per-sublane coefficient rows (once per chunk) ----
    A = w_ref[4]
    Bc = w_ref[5]
    C = w_ref[6]
    bn = Bc * inv_n                      # fold 1/N: no divide in the loop

    shape = state_ref.shape              # (8, LB)
    row = lax.broadcasted_iota(jnp.int32, shape, 0)
    zero = jnp.zeros(shape, jnp.float32)
    bn_row = jnp.where(row == 0, bn, zero)                          # [B/N,0,0,0,..]
    ac_row = jnp.where(row == 1, A, jnp.where(row == 2, C, zero))   # [0,A,C,0,..]
    h_row = jnp.full(shape, h, jnp.float32)
    lo_row = jnp.full(shape, -100000.0, jnp.float32)
    hi_row = jnp.full(shape, 100000.0, jnp.float32)

    def step(t, x):
        # Bring E (sublane 1) and I (sublane 2) onto sublane 0: static sublane
        # rolls use the XLU slot, not VALU; rows 4..7 stay exactly zero.
        ei = pltpu.roll(x, shift=7, axis=0) + pltpu.roll(x, shift=6, axis=0)
        flow = bn_row * x * ei            # row 0: (B/N)*S*(E+I); other rows 0
        g = ac_row * x                    # rows: [0, A*E, C*I, 0, ...]
        # d = [-flow, flow - A*E, A*E - C*I, C*I, 0, 0, 0, 0]
        d = (pltpu.roll(g, shift=1, axis=0) - g) \
            + (pltpu.roll(flow, shift=1, axis=0) - flow)
        xn = x + h_row * jnp.minimum(jnp.maximum(d, lo_row), hi_row)
        out_ref[t] = xn                   # one unmasked (8, LB) store per step
        return xn

    x0 = state_ref[...]
    xf = lax.fori_loop(0, t_chunk, step, x0, unroll=unroll)
    state_ref[...] = xf


def seir_rnn_forward(init, weights, *, steps, h, N, t_chunk=None):
    """init: (B, 1, 4) f32  ->  (B, steps, 1, 4) f32 (matches PyTorch forward)."""
    Bsz = init.shape[0]
    # Batch packed along lanes (free throughput up to 128 instances/vreg).
    # TODO(synk): for Bsz > 128 add a leading 'parallel' batch-tile grid axis
    # (also lets v7x's second TensorCore take half the batch).
    LB = max(128, ((Bsz + 127) // 128) * 128)

    if t_chunk is None:
        # Double-buffered output block uses 2 * t_chunk * 8 * LB * 4 bytes
        # (t_chunk=256, LB=128 -> 2 MiB), well under v7x's 32 MiB scoped VMEM.
        t_chunk = max(1, min(256, steps))
    num_chunks = (steps + t_chunk - 1) // t_chunk
    steps_pad = num_chunks * t_chunk

    # (B, 1, 4) -> (8, LB): compartments on sublanes 0..3, batch on lanes.
    x0 = jnp.zeros((8, LB), jnp.float32)
    x0 = x0.at[:4, :Bsz].set(
        jnp.transpose(init[:, 0, :].astype(jnp.float32), (1, 0)))

    kernel = functools.partial(
        _seir_chunk_kernel, t_chunk=t_chunk, h=float(h),
        inv_n=1.0 / float(N), unroll=min(8, t_chunk))

    out = pl.pallas_call(
        kernel,
        out_shape=jax.ShapeDtypeStruct((steps_pad, 8, LB), jnp.float32),
        grid_spec=pltpu.PrefetchScalarGridSpec(
            num_scalar_prefetch=0,
            grid=(num_chunks,),
            in_specs=[
                # 7 scalar weights live in SMEM, read as scalars.
                pl.BlockSpec(memory_space=pltpu.MemorySpace.SMEM),
                # initial state, same full block every chunk
                pl.BlockSpec((8, LB), lambda c: (0, 0)),
            ],
            # one lane-dense (t_chunk, 8, 128) slab per chunk
            out_specs=pl.BlockSpec((t_chunk, 8, LB), lambda c: (c, 0, 0)),
            scratch_shapes=[pltpu.VMEM((8, LB), jnp.float32)],
        ),
        compiler_params=pltpu.CompilerParams(
            dimension_semantics=("arbitrary",)),  # sequential recurrence
    )(weights.astype(jnp.float32), x0)

    # Compact slice of the padded kernel layout -> (B, steps, 1, 4).
    out = out[:steps, :4, :Bsz]                       # (steps, 4, B)
    return jnp.transpose(out, (2, 0, 1))[:, :, None, :]


def seir_ref(init, weights, steps, h, N):
    """Pure-JAX reference reproducing the PyTorch forward exactly."""
    x = init.astype(jnp.float32)              # (B, 1, 4)
    A, Bc, C = weights[4], weights[5], weights[6]
    outs = []
    for _ in range(steps):
        x0 = x[:, 0, 0]
        x1 = x[:, 0, 1]
        x2 = x[:, 0, 2]
        d1 = -1.0 * Bc * x0 * (x1 + x2) / N
        d2 = Bc * x0 * (x1 + x2) / N - A * x1
        d3 = A * x1 - C * x2
        d4 = C * x2
        d = jnp.stack([d1, d2, d3, d4], axis=-1)              # (B, 4)
        x = x + h * jnp.clip(d, -100000.0, 100000.0)[:, None, :]
        outs.append(x)
    return jnp.stack(outs, axis=1)             # (B, steps, 1, 4)


if __name__ == "__main__":
    # TODO(synk): the PyTorch forward calls print(A, B, C); this debug
    # side-effect is intentionally omitted from the kernel.
    Bsz, steps, h, N = 2, 8, 0.5, 100000.0

    # Deterministic parameter init, identical to the module's __init__.
    weights = jnp.array([100000.0, 3.0, 6.0, 0.0, 0.5, 0.2, 0.25],
                        dtype=jnp.float32)

    # Deterministic example input (B, 1, 4): S, E, I, R near the SEIR regime.
    key = jax.random.PRNGKey(0)
    base = jnp.array([[99990.0, 5.0, 3.0, 2.0]], dtype=jnp.float32)
    noise = jax.random.uniform(key, (Bsz, 4), dtype=jnp.float32,
                               minval=0.0, maxval=10.0)
    init = (base + noise)[:, None, :]          # (B, 1, 4)

    out = seir_rnn_forward(init, weights, steps=steps, h=h, N=N)
    out = jax.block_until_ready(out)

    ref = seir_ref(init, weights, steps, h, N)
    assert out.shape == (Bsz, steps, 1, 4), out.shape
    np.testing.assert_allclose(np.asarray(out), np.asarray(ref),
                               rtol=1e-5, atol=1e-2)
    print("KERNEL_OK")
</pallas_src>

<mosaic_0001>
module attributes {stable_mosaic.version = 11 : i64} {
  func.func @_seir_chunk_kernel(%arg0: i32, %arg1: memref<7xf32, #tpu.memory_space<smem>>, %arg2: memref<8x128xf32, #tpu.memory_space<vmem>>, %arg3: memref<8x8x128xf32, #tpu.memory_space<vmem>>, %arg4: memref<8x128xf32, #tpu.memory_space<vmem>>) attributes {dimension_semantics = [#tpu.dimension_semantics<arbitrary>], iteration_bounds = array<i64: 1>, scalar_prefetch = 0 : i64, scratch_operands = 1 : i64, tpu.core_type = #tpu.core_type<tc>, window_params = [{transform_indices = @transform_0, window_bounds = array<i64: 7>}, {pipeline_mode = #tpu.pipeline_mode<synchronous>, transform_indices = @transform_1, window_bounds = array<i64: 8, 128>}, {transform_indices = @transform_2, window_bounds = array<i64: 8, 8, 128>}]} {
    %c0_i32 = arith.constant 0 : i32
    %0 = arith.cmpi eq, %arg0, %c0_i32 : i32
    %1 = arith.extui %0 : i1 to i32
    %c0_i32_0 = arith.constant 0 : i32
    %2 = arith.cmpi ne, %1, %c0_i32_0 : i32
    scf.if %2 {
      %c0_60 = arith.constant 0 : index
      %c0_61 = arith.constant 0 : index
      %178 = vector.load %arg2[%c0_60, %c0_61] : memref<8x128xf32, #tpu.memory_space<vmem>>, vector<8x128xf32>
      %c0_62 = arith.constant 0 : index
      %c0_63 = arith.constant 0 : index
      %179 = vector.load %arg4[%c0_62, %c0_63] : memref<8x128xf32, #tpu.memory_space<vmem>>, vector<8x128xf32>
      tpu.vector_store %arg4[%c0_62, %c0_63], %178 {strides = array<i32>} : memref<8x128xf32, #tpu.memory_space<vmem>>, vector<8x128xf32>,
    } else {
    }
    %c4 = arith.constant 4 : index
    %3 = memref.load %arg1[%c4] : memref<7xf32, #tpu.memory_space<smem>>
    %c5 = arith.constant 5 : index
    %4 = memref.load %arg1[%c5] : memref<7xf32, #tpu.memory_space<smem>>
    %c6 = arith.constant 6 : index
    %5 = memref.load %arg1[%c6] : memref<7xf32, #tpu.memory_space<smem>>
    %cst = arith.constant 9.99999974E-6 : f32
    %6 = arith.mulf %4, %cst : f32
    %7 = tpu.iota {dimensions = array<i32: 0>} : vector<8x128xi32>
    %cst_1 = arith.constant 0.000000e+00 : f32
    %8 = vector.broadcast %cst_1 : f32 to vector<8x128xf32>
    %c0_i32_2 = arith.constant 0 : i32
    %9 = vector.broadcast %c0_i32_2 : i32 to vector<8x128xi32>
    %10 = arith.cmpi eq, %7, %9 : vector<8x128xi32>
    %11 = vector.broadcast %6 : f32 to vector<8x128xf32>
    %12 = arith.select %10, %11, %8 : vector<8x128xi1>, vector<8x128xf32>
    %c1_i32 = arith.constant 1 : i32
    %13 = vector.broadcast %c1_i32 : i32 to vector<8x128xi32>
    %14 = arith.cmpi eq, %7, %13 : vector<8x128xi32>
    %c2_i32 = arith.constant 2 : i32
    %15 = vector.broadcast %c2_i32 : i32 to vector<8x128xi32>
    %16 = arith.cmpi eq, %7, %15 : vector<8x128xi32>
    %17 = vector.broadcast %5 : f32 to vector<8x128xf32>
    %18 = arith.select %16, %17, %8 : vector<8x128xi1>, vector<8x128xf32>
    %19 = vector.broadcast %3 : f32 to vector<8x128xf32>
    %20 = arith.select %14, %19, %18 : vector<8x128xi1>, vector<8x128xf32>
    %cst_3 = arith.constant 5.000000e-01 : f32
    %21 = vector.broadcast %cst_3 : f32 to vector<8x128xf32>
    %cst_4 = arith.constant -1.000000e+05 : f32
    %22 = vector.broadcast %cst_4 : f32 to vector<8x128xf32>
    %cst_5 = arith.constant 1.000000e+05 : f32
    %23 = vector.broadcast %cst_5 : f32 to vector<8x128xf32>
    %c0 = arith.constant 0 : index
    %c0_6 = arith.constant 0 : index
    %24 = vector.load %arg4[%c0, %c0_6] : memref<8x128xf32, #tpu.memory_space<vmem>>, vector<8x128xf32>
    %c0_i32_7 = arith.constant 0 : i32
    %c7_i32 = arith.constant 7 : i32
    %25 = tpu.dynamic_rotate %24 by %c7_i32 dim 0 : vector<8x128xf32>, i32 -> vector<8x128xf32>
    %c6_i32 = arith.constant 6 : i32
    %26 = tpu.dynamic_rotate %24 by %c6_i32 dim 0 : vector<8x128xf32>, i32 -> vector<8x128xf32>
    %27 = arith.addf %25, %26 : vector<8x128xf32>
    %28 = arith.mulf %12, %24 : vector<8x128xf32>
    %29 = arith.mulf %28, %27 : vector<8x128xf32>
    %30 = arith.mulf %20, %24 : vector<8x128xf32>
    %c1_i32_8 = arith.constant 1 : i32
    %31 = tpu.dynamic_rotate %30 by %c1_i32_8 dim 0 : vector<8x128xf32>, i32 -> vector<8x128xf32>
    %32 = arith.subf %31, %30 : vector<8x128xf32>
    %c1_i32_9 = arith.constant 1 : i32
    %33 = tpu.dynamic_rotate %29 by %c1_i32_9 dim 0 : vector<8x128xf32>, i32 -> vector<8x128xf32>
    %34 = arith.subf %33, %29 : vector<8x128xf32>
    %35 = arith.addf %32, %34 : vector<8x128xf32>
    %36 = arith.maximumf %35, %22 : vector<8x128xf32>
    %37 = arith.minimumf %36, %23 : vector<8x128xf32>
    %38 = arith.mulf %21, %37 : vector<8x128xf32>
    %39 = arith.addf %24, %38 : vector<8x128xf32>
    %40 = arith.index_cast %c0_i32_7 : i32 to index
    %c0_10 = arith.constant 0 : index
    %c0_11 = arith.constant 0 : index
    %41 = vector.load %arg3[%40, %c0_10, %c0_11] : memref<8x8x128xf32, #tpu.memory_space<vmem>>, vector<1x8x128xf32>
    %42 = vector.shape_cast %41 : vector<1x8x128xf32> to vector<8x128xf32>
    %43 = vector.shape_cast %39 : vector<8x128xf32> to vector<1x8x128xf32>
    tpu.vector_store %arg3[%40, %c0_10, %c0_11], %43 {strides = array<i32>} : memref<8x8x128xf32, #tpu.memory_space<vmem>>, vector<1x8x128xf32>,
    %c1_i32_12 = arith.constant 1 : i32
    %c7_i32_13 = arith.constant 7 : i32
    %44 = tpu.dynamic_rotate %39 by %c7_i32_13 dim 0 : vector<8x128xf32>, i32 -> vector<8x128xf32>
    %c6_i32_14 = arith.constant 6 : i32
    %45 = tpu.dynamic_rotate %39 by %c6_i32_14 dim 0 : vector<8x128xf32>, i32 -> vector<8x128xf32>
    %46 = arith.addf %44, %45 : vector<8x128xf32>
    %47 = arith.mulf %12, %39 : vector<8x128xf32>
    %48 = arith.mulf %47, %46 : vector<8x128xf32>
    %49 = arith.mulf %20, %39 : vector<8x128xf32>
    %c1_i32_15 = arith.constant 1 : i32
    %50 = tpu.dynamic_rotate %49 by %c1_i32_15 dim 0 : vector<8x128xf32>, i32 -> vector<8x128xf32>
    %51 = arith.subf %50, %49 : vector<8x128xf32>
    %c1_i32_16 = arith.constant 1 : i32
    %52 = tpu.dynamic_rotate %48 by %c1_i32_16 dim 0 : vector<8x128xf32>, i32 -> vector<8x128xf32>
    %53 = arith.subf %52, %48 : vector<8x128xf32>
    %54 = arith.addf %51, %53 : vector<8x128xf32>
    %55 = arith.maximumf %54, %22 : vector<8x128xf32>
    %56 = arith.minimumf %55, %23 : vector<8x128xf32>
    %57 = arith.mulf %21, %56 : vector<8x128xf32>
    %58 = arith.addf %39, %57 : vector<8x128xf32>
    %59 = arith.index_cast %c1_i32_12 : i32 to index
    %c0_17 = arith.constant 0 : index
    %c0_18 = arith.constant 0 : index
    %60 = vector.load %arg3[%59, %c0_17, %c0_18] : memref<8x8x128xf32, #tpu.memory_space<vmem>>, vector<1x8x128xf32>
    %61 = vector.shape_cast %60 : vector<1x8x128xf32> to vector<8x128xf32>
    %62 = vector.shape_cast %58 : vector<8x128xf32> to vector<1x8x128xf32>
    tpu.vector_store %arg3[%59, %c0_17, %c0_18], %62 {strides = array<i32>} : memref<8x8x128xf32, #tpu.memory_space<vmem>>, vector<1x8x128xf32>,
    %c2_i32_19 = arith.constant 2 : i32
    %c7_i32_20 = arith.constant 7 : i32
    %63 = tpu.dynamic_rotate %58 by %c7_i32_20 dim 0 : vector<8x128xf32>, i32 -> vector<8x128xf32>
    %c6_i32_21 = arith.constant 6 : i32
    %64 = tpu.dynamic_rotate %58 by %c6_i32_21 dim 0 : vector<8x128xf32>, i32 -> vector<8x128xf32>
    %65 = arith.addf %63, %64 : vector<8x128xf32>
    %66 = arith.mulf %12, %58 : vector<8x128xf32>
    %67 = arith.mulf %66, %65 : vector<8x128xf32>
    %68 = arith.mulf %20, %58 : vector<8x128xf32>
    %c1_i32_22 = arith.constant 1 : i32
    %69 = tpu.dynamic_rotate %68 by %c1_i32_22 dim 0 : vector<8x128xf32>, i32 -> vector<8x128xf32>
    %70 = arith.subf %69, %68 : vector<8x128xf32>
    %c1_i32_23 = arith.constant 1 : i32
    %71 = tpu.dynamic_rotate %67 by %c1_i32_23 dim 0 : vector<8x128xf32>, i32 -> vector<8x128xf32>
    %72 = arith.subf %71, %67 : vector<8x128xf32>
    %73 = arith.addf %70, %72 : vector<8x128xf32>
    %74 = arith.maximumf %73, %22 : vector<8x128xf32>
    %75 = arith.minimumf %74, %23 : vector<8x128xf32>
    %76 = arith.mulf %21, %75 : vector<8x128xf32>
    %77 = arith.addf %58, %76 : vector<8x128xf32>
    %78 = arith.index_cast %c2_i32_19 : i32 to index
    %c0_24 = arith.constant 0 : index
    %c0_25 = arith.constant 0 : index
    %79 = vector.load %arg3[%78, %c0_24, %c0_25] : memref<8x8x128xf32, #tpu.memory_space<vmem>>, vector<1x8x128xf32>
    %80 = vector.shape_cast %79 : vector<1x8x128xf32> to vector<8x128xf32>
    %81 = vector.shape_cast %77 : vector<8x128xf32> to vector<1x8x128xf32>
    tpu.vector_store %arg3[%78, %c0_24, %c0_25], %81 {strides = array<i32>} : memref<8x8x128xf32, #tpu.memory_space<vmem>>, vector<1x8x128xf32>,
    %c3_i32 = arith.constant 3 : i32
    %c7_i32_26 = arith.constant 7 : i32
    %82 = tpu.dynamic_rotate %77 by %c7_i32_26 dim 0 : vector<8x128xf32>, i32 -> vector<8x128xf32>
    %c6_i32_27 = arith.constant 6 : i32
    %83 = tpu.dynamic_rotate %77 by %c6_i32_27 dim 0 : vector<8x128xf32>, i32 -> vector<8x128xf32>
    %84 = arith.addf %82, %83 : vector<8x128xf32>
    %85 = arith.mulf %12, %77 : vector<8x128xf32>
    %86 = arith.mulf %85, %84 : vector<8x128xf32>
    %87 = arith.mulf %20, %77 : vector<8x128xf32>
    %c1_i32_28 = arith.constant 1 : i32
    %88 = tpu.dynamic_rotate %87 by %c1_i32_28 dim 0 : vector<8x128xf32>, i32 -> vector<8x128xf32>
    %89 = arith.subf %88, %87 : vector<8x128xf32>
    %c1_i32_29 = arith.constant 1 : i32
    %90 = tpu.dynamic_rotate %86 by %c1_i32_29 dim 0 : vector<8x128xf32>, i32 -> vector<8x128xf32>
    %91 = arith.subf %90, %86 : vector<8x128xf32>
    %92 = arith.addf %89, %91 : vector<8x128xf32>
    %93 = arith.maximumf %92, %22 : vector<8x128xf32>
    %94 = arith.minimumf %93, %23 : vector<8x128xf32>
    %95 = arith.mulf %21, %94 : vector<8x128xf32>
    %96 = arith.addf %77, %95 : vector<8x128xf32>
    %97 = arith.index_cast %c3_i32 : i32 to index
    %c0_30 = arith.constant 0 : index
    %c0_31 = arith.constant 0 : index
    %98 = vector.load %arg3[%97, %c0_30, %c0_31] : memref<8x8x128xf32, #tpu.memory_space<vmem>>, vector<1x8x128xf32>
    %99 = vector.shape_cast %98 : vector<1x8x128xf32> to vector<8x128xf32>
    %100 = vector.shape_cast %96 : vector<8x128xf32> to vector<1x8x128xf32>
    tpu.vector_store %arg3[%97, %c0_30, %c0_31], %100 {strides = array<i32>} : memref<8x8x128xf32, #tpu.memory_space<vmem>>, vector<1x8x128xf32>,
    %c4_i32 = arith.constant 4 : i32
    %c7_i32_32 = arith.constant 7 : i32
    %101 = tpu.dynamic_rotate %96 by %c7_i32_32 dim 0 : vector<8x128xf32>, i32 -> vector<8x128xf32>
    %c6_i32_33 = arith.constant 6 : i32
    %102 = tpu.dynamic_rotate %96 by %c6_i32_33 dim 0 : vector<8x128xf32>, i32 -> vector<8x128xf32>
    %103 = arith.addf %101, %102 : vector<8x128xf32>
    %104 = arith.mulf %12, %96 : vector<8x128xf32>
    %105 = arith.mulf %104, %103 : vector<8x128xf32>
    %106 = arith.mulf %20, %96 : vector<8x128xf32>
    %c1_i32_34 = arith.constant 1 : i32
    %107 = tpu.dynamic_rotate %106 by %c1_i32_34 dim 0 : vector<8x128xf32>, i32 -> vector<8x128xf32>
    %108 = arith.subf %107, %106 : vector<8x128xf32>
    %c1_i32_35 = arith.constant 1 : i32
    %109 = tpu.dynamic_rotate %105 by %c1_i32_35 dim 0 : vector<8x128xf32>, i32 -> vector<8x128xf32>
    %110 = arith.subf %109, %105 : vector<8x128xf32>
    %111 = arith.addf %108, %110 : vector<8x128xf32>
    %112 = arith.maximumf %111, %22 : vector<8x128xf32>
    %113 = arith.minimumf %112, %23 : vector<8x128xf32>
    %114 = arith.mulf %21, %113 : vector<8x128xf32>
    %115 = arith.addf %96, %114 : vector<8x128xf32>
    %116 = arith.index_cast %c4_i32 : i32 to index
    %c0_36 = arith.constant 0 : index
    %c0_37 = arith.constant 0 : index
    %117 = vector.load %arg3[%116, %c0_36, %c0_37] : memref<8x8x128xf32, #tpu.memory_space<vmem>>, vector<1x8x128xf32>
    %118 = vector.shape_cast %117 : vector<1x8x128xf32> to vector<8x128xf32>
    %119 = vector.shape_cast %115 : vector<8x128xf32> to vector<1x8x128xf32>
    tpu.vector_store %arg3[%116, %c0_36, %c0_37], %119 {strides = array<i32>} : memref<8x8x128xf32, #tpu.memory_space<vmem>>, vector<1x8x128xf32>,
    %c5_i32 = arith.constant 5 : i32
    %c7_i32_38 = arith.constant 7 : i32
    %120 = tpu.dynamic_rotate %115 by %c7_i32_38 dim 0 : vector<8x128xf32>, i32 -> vector<8x128xf32>
    %c6_i32_39 = arith.constant 6 : i32
    %121 = tpu.dynamic_rotate %115 by %c6_i32_39 dim 0 : vector<8x128xf32>, i32 -> vector<8x128xf32>
    %122 = arith.addf %120, %121 : vector<8x128xf32>
    %123 = arith.mulf %12, %115 : vector<8x128xf32>
    %124 = arith.mulf %123, %122 : vector<8x128xf32>
    %125 = arith.mulf %20, %115 : vector<8x128xf32>
    %c1_i32_40 = arith.constant 1 : i32
    %126 = tpu.dynamic_rotate %125 by %c1_i32_40 dim 0 : vector<8x128xf32>, i32 -> vector<8x128xf32>
    %127 = arith.subf %126, %125 : vector<8x128xf32>
    %c1_i32_41 = arith.constant 1 : i32
    %128 = tpu.dynamic_rotate %124 by %c1_i32_41 dim 0 : vector<8x128xf32>, i32 -> vector<8x128xf32>
    %129 = arith.subf %128, %124 : vector<8x128xf32>
    %130 = arith.addf %127, %129 : vector<8x128xf32>
    %131 = arith.maximumf %130, %22 : vector<8x128xf32>
    %132 = arith.minimumf %131, %23 : vector<8x128xf32>
    %133 = arith.mulf %21, %132 : vector<8x128xf32>
    %134 = arith.addf %115, %133 : vector<8x128xf32>
    %135 = arith.index_cast %c5_i32 : i32 to index
    %c0_42 = arith.constant 0 : index
    %c0_43 = arith.constant 0 : index
    %136 = vector.load %arg3[%135, %c0_42, %c0_43] : memref<8x8x128xf32, #tpu.memory_space<vmem>>, vector<1x8x128xf32>
    %137 = vector.shape_cast %136 : vector<1x8x128xf32> to vector<8x128xf32>
    %138 = vector.shape_cast %134 : vector<8x128xf32> to vector<1x8x128xf32>
    tpu.vector_store %arg3[%135, %c0_42, %c0_43], %138 {strides = array<i32>} : memref<8x8x128xf32, #tpu.memory_space<vmem>>, vector<1x8x128xf32>,
    %c6_i32_44 = arith.constant 6 : i32
    %c7_i32_45 = arith.constant 7 : i32
    %139 = tpu.dynamic_rotate %134 by %c7_i32_45 dim 0 : vector<8x128xf32>, i32 -> vector<8x128xf32>
    %c6_i32_46 = arith.constant 6 : i32
    %140 = tpu.dynamic_rotate %134 by %c6_i32_46 dim 0 : vector<8x128xf32>, i32 -> vector<8x128xf32>
    %141 = arith.addf %139, %140 : vector<8x128xf32>
    %142 = arith.mulf %12, %134 : vector<8x128xf32>
    %143 = arith.mulf %142, %141 : vector<8x128xf32>
    %144 = arith.mulf %20, %134 : vector<8x128xf32>
    %c1_i32_47 = arith.constant 1 : i32
    %145 = tpu.dynamic_rotate %144 by %c1_i32_47 dim 0 : vector<8x128xf32>, i32 -> vector<8x128xf32>
    %146 = arith.subf %145, %144 : vector<8x128xf32>
    %c1_i32_48 = arith.constant 1 : i32
    %147 = tpu.dynamic_rotate %143 by %c1_i32_48 dim 0 : vector<8x128xf32>, i32 -> vector<8x128xf32>
    %148 = arith.subf %147, %143 : vector<8x128xf32>
    %149 = arith.addf %146, %148 : vector<8x128xf32>
    %150 = arith.maximumf %149, %22 : vector<8x128xf32>
    %151 = arith.minimumf %150, %23 : vector<8x128xf32>
    %152 = arith.mulf %21, %151 : vector<8x128xf32>
    %153 = arith.addf %134, %152 : vector<8x128xf32>
    %154 = arith.index_cast %c6_i32_44 : i32 to index
    %c0_49 = arith.constant 0 : index
    %c0_50 = arith.constant 0 : index
    %155 = vector.load %arg3[%154, %c0_49, %c0_50] : memref<8x8x128xf32, #tpu.memory_space<vmem>>, vector<1x8x128xf32>
    %156 = vector.shape_cast %155 : vector<1x8x128xf32> to vector<8x128xf32>
    %157 = vector.shape_cast %153 : vector<8x128xf32> to vector<1x8x128xf32>
    tpu.vector_store %arg3[%154, %c0_49, %c0_50], %157 {strides = array<i32>} : memref<8x8x128xf32, #tpu.memory_space<vmem>>, vector<1x8x128xf32>,
    %c7_i32_51 = arith.constant 7 : i32
    %c7_i32_52 = arith.constant 7 : i32
    %158 = tpu.dynamic_rotate %153 by %c7_i32_52 dim 0 : vector<8x128xf32>, i32 -> vector<8x128xf32>
    %c6_i32_53 = arith.constant 6 : i32
    %159 = tpu.dynamic_rotate %153 by %c6_i32_53 dim 0 : vector<8x128xf32>, i32 -> vector<8x128xf32>
    %160 = arith.addf %158, %159 : vector<8x128xf32>
    %161 = arith.mulf %12, %153 : vector<8x128xf32>
    %162 = arith.mulf %161, %160 : vector<8x128xf32>
    %163 = arith.mulf %20, %153 : vector<8x128xf32>
    %c1_i32_54 = arith.constant 1 : i32
    %164 = tpu.dynamic_rotate %163 by %c1_i32_54 dim 0 : vector<8x128xf32>, i32 -> vector<8x128xf32>
    %165 = arith.subf %164, %163 : vector<8x128xf32>
    %c1_i32_55 = arith.constant 1 : i32
    %166 = tpu.dynamic_rotate %162 by %c1_i32_55 dim 0 : vector<8x128xf32>, i32 -> vector<8x128xf32>
    %167 = arith.subf %166, %162 : vector<8x128xf32>
    %168 = arith.addf %165, %167 : vector<8x128xf32>
    %169 = arith.maximumf %168, %22 : vector<8x128xf32>
    %170 = arith.minimumf %169, %23 : vector<8x128xf32>
    %171 = arith.mulf %21, %170 : vector<8x128xf32>
    %172 = arith.addf %153, %171 : vector<8x128xf32>
    %173 = arith.index_cast %c7_i32_51 : i32 to index
    %c0_56 = arith.constant 0 : index
    %c0_57 = arith.constant 0 : index
    %174 = vector.load %arg3[%173, %c0_56, %c0_57] : memref<8x8x128xf32, #tpu.memory_space<vmem>>, vector<1x8x128xf32>
    %175 = vector.shape_cast %174 : vector<1x8x128xf32> to vector<8x128xf32>
    %176 = vector.shape_cast %172 : vector<8x128xf32> to vector<1x8x128xf32>
    tpu.vector_store %arg3[%173, %c0_56, %c0_57], %176 {strides = array<i32>} : memref<8x8x128xf32, #tpu.memory_space<vmem>>, vector<1x8x128xf32>,
    %c8_i32 = arith.constant 8 : i32
    %c0_58 = arith.constant 0 : index
    %c0_59 = arith.constant 0 : index
    %177 = vector.load %arg4[%c0_58, %c0_59] : memref<8x128xf32, #tpu.memory_space<vmem>>, vector<8x128xf32>
    tpu.vector_store %arg4[%c0_58, %c0_59], %172 {strides = array<i32>} : memref<8x128xf32, #tpu.memory_space<vmem>>, vector<8x128xf32>,
    return
  }
  func.func @transform_0(%arg0: i32) -> i32 {
    %c0_i32 = arith.constant 0 : i32
    %c0_i32_0 = arith.constant 0 : i32
    return %c0_i32 : i32
  }
  func.func @transform_1(%arg0: i32) -> (i32, i32) {
    %c0_i32 = arith.constant 0 : i32
    %c0_i32_0 = arith.constant 0 : i32
    %c0_i32_1 = arith.constant 0 : i32
    return %c0_i32, %c0_i32_0 : i32, i32
  }
  func.func @transform_2(%arg0: i32) -> (i32, i32, i32) {
    %c0_i32 = arith.constant 0 : i32
    %c0_i32_0 = arith.constant 0 : i32
    %c0_i32_1 = arith.constant 0 : i32
    return %arg0, %c0_i32, %c0_i32_0 : i32, i32, i32
  }
}

</mosaic_0001>

<bundles_post_ra>
// kernel: tpu_custom_call.1
= control target key start
LH: loop header
LB: loop body
LE: loop exit
PB: predicated region body
PF: predicated region fallthrough
CT: control target
= control target key end

     0   :  { %7 = vsyncpa [#allocation6], 0  ;;  %s363_s0 = inlined_call_operand.hbm [shape: f32[7], index: 0, kind: input, shape index: {}]   ;;  %s364_s1 = inlined_call_operand.hbm [shape: f32[8,128], index: 1, kind: input, shape index: {}]   ;;  %s365_s2 = inlined_call_operand.hbm [shape: f32[8,8,128], index: 2, kind: output, shape index: {}]  }
   0x1   :  { %8 = vsyncpa [#allocation4], 0 }
   0x2   :  { %9 = vsyncpa [#allocation5], 0  ;;  %s227_s11 = scalar_lea.hbm %s363_s0, 16 }
   0x3   :  { %p228_p0 = scmp.ne.s32.totalorder %s363_s0, %s227_s11  ;;  %p231_p1 = scmp.lt.u32.totalorder %s227_s11, %s363_s0 }
   0x5   :  { %p233_p2 = pnand %p231_p1, %p228_p0 }
   0x7   :  { %236 = shalt.err (!%p233_p2)
}
   0x8   :  { %s287_s16 = smov [#allocation3]   ;;  %s288_s19 = smov [#allocation7]  }
   0x9   :  { %17 = dma.hbm_to_smem %s363_s0, 16, %s287_s16, [#allocation6]  }
   0xa   :  { %s24_s20 = sshll.u32 %s288_s19, 4  ;;  %s237_s23 = scalar_lea.hbm %s364_s1, 128  ;;  %s25_s20 = int_to_ptr.vmem [resolvable:$true] %s24_s20 }
   0xb   :  { %p238_p3 = scmp.ne.s32.totalorder %s364_s1, %s237_s23  ;;  %p241_p4 = scmp.lt.u32.totalorder %s237_s23, %s364_s1 }
   0xd   :  { %p243_p5 = pnand %p241_p4, %p238_p3 }
   0xf   :  { %246 = shalt.err (!%p243_p5)
}
  0x10   :  { %s247_s28 = scalar_lea.vmem %s25_s20, 128  ;;  %p252_p7 = scmp.lt.s32.totalorder %s25_s20, %s25_s20 }
  0x11   :  { %p248_p6 = scmp.ne.s32.totalorder %s25_s20, %s247_s28  ;;  %p253_p8 = scmp.lt.s32.totalorder %s247_s28, %s247_s28 }
  0x13   :  { %p254_p9 = por %p253_p8, %p252_p7 }
  0x15   :  { %p255_p10 = pnand %p254_p9, %p248_p6 }
  0x17   :  { %258 = shalt.err (!%p255_p10)
}
  0x18   :  { %27 = dma.hbm_to_vmem [thread:$0]  %s364_s1, 128, %s25_s20, [#allocation4]  }
  0x19   :  { %281 = dma.done.wait [#allocation6], 16  }
  0x1a   :  { %282 = vsyncadd [#allocation6], 4294967280 }
  0x1b   :  { %283 = dma.done.wait [#allocation4], 128  }
  0x1c   :  { %284 = vsyncadd [#allocation4], 4294967168 }
  0x1d   :  { %34 = sfence }
  0x1e   :  { %s211_s30 = sld [smem:[#allocation3 + $0x4]]  ;;  %s212_s3 = sld [smem:[#allocation3 + $0x5]]  ;;  %v45_v0 = vlaneseq  ;;  %v39_v1 = vld [vmem:[#allocation7] sm:$0xff] }
  0x1f   :  { %s213_s4 = sld [smem:[#allocation3 + $0x6]]  ;;  %v57_v3 = vrot.slane %v39_v1, 1  ;;  %v58_v4 = vrot.slane %v39_v1, 2  ;;  %s289_s1 = smov [#allocation8]  }
  0x20   :  { %v46_v2 = vshrl.u32 %v45_v0, 7  ;;  %s198_s6 = sshll.u32 %s289_s1, 4  ;;  %s199_s6 = int_to_ptr.vmem [resolvable:$true] %s198_s6 }
  0x21   :  { %v59_v9 = vadd.f32 %v58_v4, %v57_v3  ;;  %s259_s7 = scalar_lea.vmem %s199_s6, 1024  ;;  %p264_p12 = scmp.lt.s32.totalorder %s199_s6, %s199_s6 }
  0x22   :  { %vm51_vm0 = vcmp.eq.s32.totalorder %v46_v2, 2  ;;  %vm47_vm1 = vcmp.eq.s32.totalorder %v46_v2, 0  ;;  %vm50_vm2 = vcmp.eq.s32.totalorder %v46_v2, 1  ;;  %p260_p11 = scmp.ne.s32.totalorder %s199_s6, %s259_s7  ;;  %p265_p13 = scmp.lt.s32.totalorder %s259_s7, %s259_s7 }
  0x24   :  { %s44_s5 = smul.f32 1e-05, %s212_s3  ;;  %v54_v5 = vstv %s211_s30  ;;  %p266_p0 = por %p265_p13, %p264_p12 }
  0x25   :  { %v52_v6 = vstv %s213_s4 }
  0x26   :  { %v48_v7 = vstv %s44_s5  ;;  %v53_v8 = vsel %vm51_vm0, %v52_v6, 0.0  ;;  %p267_p1 = pnand %p266_p0, %p260_p11 }
  0x27   :  { %v331_v10 = vsel %vm47_vm1, %v48_v7, 0.0  ;;  %v333_v11 = vsel %vm50_vm2, %v54_v5, %v53_v8 }
  0x28   :  { %v60_v12 = vmul.f32 %v331_v10, %v39_v1  ;;  %v62_v13 = vmul.f32 %v333_v11, %v39_v1 }
  0x2a   :  { %v61_v14 = vmul.f32 %v60_v12, %v59_v9  ;;  %v63_v15 = vrot.slane %v62_v13, 7 }
  0x2c   :  { %v64_v16 = vsub.f32 %v63_v15, %v62_v13  ;;  %v65_v17 = vrot.slane %v61_v14, 7 }
  0x2e   :  { %v66_v18 = vsub.f32 %v65_v17, %v61_v14 }
  0x30   :  { %v67_v19 = vadd.f32 %v66_v18, %v64_v16 }
  0x32   :  { %v214_v20 = vclamps-f32 %v67_v19, 100000.0 }
  0x34   :  { %v70_v21 = vmul.f32 0.5, %v214_v20 }
  0x36   :  { %v71_v22 = vadd.f32 %v70_v21, %v39_v1 }
  0x38   :  { %72 = vst [vmem:[#allocation8] sm:$0xff] %v71_v22  ;;  %v73_v23 = vrot.slane %v71_v22, 1  ;;  %v74_v24 = vrot.slane %v71_v22, 2  ;;  %v76_v25 = vmul.f32 %v71_v22, %v331_v10  ;;  %v78_v26 = vmul.f32 %v71_v22, %v333_v11 }
  0x3a   :  { %v75_v27 = vadd.f32 %v74_v24, %v73_v23  ;;  %v79_v28 = vrot.slane %v78_v26, 7 }
  0x3c   :  { %v77_v29 = vmul.f32 %v76_v25, %v75_v27  ;;  %v80_v30 = vsub.f32 %v79_v28, %v78_v26 }
  0x3e   :  { %v81_v31 = vrot.slane %v77_v29, 7 }
  0x40   :  { %v82_v32 = vsub.f32 %v81_v31, %v77_v29 }
  0x42   :  { %v83_v33 = vadd.f32 %v82_v32, %v80_v30 }
  0x44   :  { %v215_v34 = vclamps-f32 %v83_v33, 100000.0 }
  0x46   :  { %v86_v35 = vmul.f32 0.5, %v215_v34 }
  0x48   :  { %v87_v36 = vadd.f32 %v86_v35, %v71_v22 }
  0x4a   :  { %89 = vst [vmem:[#allocation8 + $0x8] sm:$0xff] %v87_v36  ;;  %v90_v37 = vrot.slane %v87_v36, 1  ;;  %v91_v38 = vrot.slane %v87_v36, 2  ;;  %v93_v39 = vmul.f32 %v87_v36, %v331_v10  ;;  %v95_v40 = vmul.f32 %v87_v36, %v333_v11 }
  0x4c   :  { %v92_v41 = vadd.f32 %v91_v38, %v90_v37  ;;  %v96_v42 = vrot.slane %v95_v40, 7 }
  0x4e   :  { %v94_v43 = vmul.f32 %v93_v39, %v92_v41  ;;  %v97_v44 = vsub.f32 %v96_v42, %v95_v40 }
  0x50   :  { %v98_v45 = vrot.slane %v94_v43, 7 }
  0x52   :  { %v99_v46 = vsub.f32 %v98_v45, %v94_v43 }
  0x54   :  { %v100_v47 = vadd.f32 %v99_v46, %v97_v44 }
  0x56   :  { %v216_v48 = vclamps-f32 %v100_v47, 100000.0 }
  0x58   :  { %v103_v49 = vmul.f32 0.5, %v216_v48 }
  0x5a   :  { %v104_v50 = vadd.f32 %v103_v49, %v87_v36 }
  0x5c   :  { %106 = vst [vmem:[#allocation8 + $0x10] sm:$0xff] %v104_v50  ;;  %v107_v51 = vrot.slane %v104_v50, 1  ;;  %v108_v52 = vrot.slane %v104_v50, 2  ;;  %v110_v53 = vmul.f32 %v104_v50, %v331_v10  ;;  %v112_v54 = vmul.f32 %v104_v50, %v333_v11 }
  0x5e   :  { %v109_v55 = vadd.f32 %v108_v52, %v107_v51  ;;  %v113_v56 = vrot.slane %v112_v54, 7 }
  0x60   :  { %v111_v57 = vmul.f32 %v110_v53, %v109_v55  ;;  %v114_v58 = vsub.f32 %v113_v56, %v112_v54 }
  0x62   :  { %v115_v59 = vrot.slane %v111_v57, 7 }
  0x64   :  { %v116_v60 = vsub.f32 %v115_v59, %v111_v57 }
  0x66   :  { %v117_v61 = vadd.f32 %v116_v60, %v114_v58 }
  0x68   :  { %v217_v62 = vclamps-f32 %v117_v61, 100000.0 }
  0x6a   :  { %v120_v63 = vmul.f32 0.5, %v217_v62 }
  0x6c   :  { %v121_v0 = vadd.f32 %v120_v63, %v104_v50 }
  0x6e   :  { %123 = vst [vmem:[#allocation8 + $0x18] sm:$0xff] %v121_v0  ;;  %v124_v1 = vrot.slane %v121_v0, 1  ;;  %v125_v2 = vrot.slane %v121_v0, 2  ;;  %v127_v3 = vmul.f32 %v121_v0, %v331_v10  ;;  %v129_v4 = vmul.f32 %v121_v0, %v333_v11 }
  0x70   :  { %v126_v5 = vadd.f32 %v125_v2, %v124_v1  ;;  %v130_v6 = vrot.slane %v129_v4, 7 }
  0x72   :  { %v128_v7 = vmul.f32 %v127_v3, %v126_v5  ;;  %v131_v8 = vsub.f32 %v130_v6, %v129_v4 }
  0x74   :  { %v132_v9 = vrot.slane %v128_v7, 7 }
  0x76   :  { %v133_v12 = vsub.f32 %v132_v9, %v128_v7 }
  0x78   :  { %v134_v13 = vadd.f32 %v133_v12, %v131_v8 }
  0x7a   :  { %v218_v14 = vclamps-f32 %v134_v13, 100000.0 }
  0x7c   :  { %v137_v15 = vmul.f32 0.5, %v218_v14 }
  0x7e   :  { %v138_v16 = vadd.f32 %v137_v15, %v121_v0 }
  0x80   :  { %140 = vst [vmem:[#allocation8 + $0x20] sm:$0xff] %v138_v16  ;;  %v141_v17 = vrot.slane %v138_v16, 1  ;;  %v142_v18 = vrot.slane %v138_v16, 2  ;;  %v144_v19 = vmul.f32 %v138_v16, %v331_v10  ;;  %v146_v20 = vmul.f32 %v138_v16, %v333_v11 }
  0x82   :  { %v143_v21 = vadd.f32 %v142_v18, %v141_v17  ;;  %v147_v22 = vrot.slane %v146_v20, 7 }
  0x84   :  { %v145_v23 = vmul.f32 %v144_v19, %v143_v21  ;;  %v148_v24 = vsub.f32 %v147_v22, %v146_v20 }
  0x86   :  { %v149_v25 = vrot.slane %v145_v23, 7 }
  0x88   :  { %v150_v26 = vsub.f32 %v149_v25, %v145_v23 }
  0x8a   :  { %v151_v27 = vadd.f32 %v150_v26, %v148_v24 }
  0x8c   :  { %v219_v28 = vclamps-f32 %v151_v27, 100000.0 }
  0x8e   :  { %v154_v29 = vmul.f32 0.5, %v219_v28 }
  0x90   :  { %v155_v30 = vadd.f32 %v154_v29, %v138_v16 }
  0x92   :  { %157 = vst [vmem:[#allocation8 + $0x28] sm:$0xff] %v155_v30  ;;  %v158_v31 = vrot.slane %v155_v30, 1  ;;  %v159_v32 = vrot.slane %v155_v30, 2  ;;  %v161_v33 = vmul.f32 %v155_v30, %v331_v10  ;;  %v163_v34 = vmul.f32 %v155_v30, %v333_v11 }
  0x94   :  { %v160_v35 = vadd.f32 %v159_v32, %v158_v31  ;;  %v164_v36 = vrot.slane %v163_v34, 7 }
  0x96   :  { %v162_v37 = vmul.f32 %v161_v33, %v160_v35  ;;  %v165_v38 = vsub.f32 %v164_v36, %v163_v34 }
  0x98   :  { %v166_v39 = vrot.slane %v162_v37, 7 }
  0x9a   :  { %v167_v40 = vsub.f32 %v166_v39, %v162_v37 }
  0x9c   :  { %v168_v41 = vadd.f32 %v167_v40, %v165_v38 }
  0x9e   :  { %v220_v42 = vclamps-f32 %v168_v41, 100000.0 }
  0xa0   :  { %v171_v43 = vmul.f32 0.5, %v220_v42 }
  0xa2   :  { %v172_v44 = vadd.f32 %v171_v43, %v155_v30 }
  0xa4   :  { %174 = vst [vmem:[#allocation8 + $0x30] sm:$0xff] %v172_v44  ;;  %v175_v45 = vrot.slane %v172_v44, 1  ;;  %v176_v46 = vrot.slane %v172_v44, 2  ;;  %v178_v47 = vmul.f32 %v172_v44, %v331_v10  ;;  %v180_v48 = vmul.f32 %v172_v44, %v333_v11 }
  0xa6   :  { %v177_v49 = vadd.f32 %v176_v46, %v175_v45  ;;  %v181_v50 = vrot.slane %v180_v48, 7 }
  0xa8   :  { %v179_v51 = vmul.f32 %v178_v47, %v177_v49  ;;  %v182_v52 = vsub.f32 %v181_v50, %v180_v48 }
  0xaa   :  { %v183_v53 = vrot.slane %v179_v51, 7 }
  0xac   :  { %v184_v54 = vsub.f32 %v183_v53, %v179_v51 }
  0xae   :  { %v185_v55 = vadd.f32 %v184_v54, %v182_v52 }
  0xb0   :  { %v221_v56 = vclamps-f32 %v185_v55, 100000.0 }
  0xb2   :  { %v188_v57 = vmul.f32 0.5, %v221_v56 }
  0xb4   :  { %v189_v58 = vadd.f32 %v188_v57, %v172_v44 }
  0xb6   :  { %191 = vst [vmem:[#allocation8 + $0x38] sm:$0xff] %v189_v58 }
  0xb7   :  { %270 = shalt.err (!%p267_p1)
}
  0xb8   :  { %s271_s10 = scalar_lea.hbm %s365_s2, 1024 }
  0xb9   :  { %p272_p2 = scmp.ne.s32.totalorder %s365_s2, %s271_s10  ;;  %p275_p3 = scmp.lt.u32.totalorder %s271_s10, %s365_s2 }
  0xbb   :  { %p277_p4 = pnand %p275_p3, %p272_p2 }
  0xbd   :  { %280 = shalt.err (!%p277_p4)
}
  0xbe   :  { %s290_s15 = smov 128   ;;  %s291_s16 = smov 8  }
  0xbf   :  { %204 = dma.vmem_to_hbm [thread:$0]  %s199_s6, 1024, %s365_s2, [#allocation5], %s290_s15, %s290_s15, %s291_s16  }
  0xc0   :  { %285 = dma.done.wait [#allocation5], 1024  }
  0xc1   :  { %286 = vsyncadd [#allocation5], 4294966272 }
  0xc2   :  { %208 = vsyncpa [#allocation4], 1 }
  0xc3   :  { %209 = vsyncpa [#allocation5], 1 }
  0xc4   :  { %210 = vsyncpa [#allocation6], 1 }

</bundles_post_ra>
